<compile_context>
chip_gen: v5e
topology: v5e:2x2
jax: 0.10.0
libtpu: 0.0.40
codegen_flags: <defaults>
</compile_context>

<pallas_src>
import jax
import jax.numpy as jnp
from jax.experimental import pallas as pl
from jax.experimental.pallas import tpu as pltpu

_LANES = 128


def _fused_minimum_kernel(x_ref, y_ref, z_ref, out0_ref, out1_ref, out2_ref):
    y = y_ref[...]
    out0_ref[...] = jnp.minimum(x_ref[...], y)
    # torch.minimum(y, y) is the identity on y (including NaN / signed zeros),
    # so a plain copy suffices; the output buffer is aliased to y's buffer.
    out1_ref[...] = y
    z = z_ref[...]
    # torch.ones_like(z) + 0.1 -> scalar constant (1.0 + 0.1 in z's dtype).
    limit = jnp.asarray(1.0, z_ref.dtype) + jnp.asarray(0.1, z_ref.dtype)
    out2_ref[...] = jnp.minimum(z, limit)


def _to_lane_dense_2d(a):
    """Flatten to (rows, 128), zero-padding the tail so stores are full-lane."""
    n = a.size
    flat = a.reshape(-1)
    pad = (-n) % _LANES
    if pad:
        flat = jnp.pad(flat, (0, pad))
    return flat.reshape(-1, _LANES)


def _from_lane_dense_2d(a2d, shape, n):
    return a2d.reshape(-1)[:n].reshape(shape)


def model_forward(x, y, z):
    assert x.shape == y.shape and x.dtype == y.dtype

    x2 = _to_lane_dense_2d(x)  # (16, 128) for the toy shapes
    y2 = _to_lane_dense_2d(y)  # (16, 128)
    z2 = _to_lane_dense_2d(z)  # (1, 128)  (96 valid elements, 32 pad)

    vmem = pl.BlockSpec(memory_space=pltpu.VMEM)
    out0_2, out1_2, out2_2 = pl.pallas_call(
        _fused_minimum_kernel,
        out_shape=(
            jax.ShapeDtypeStruct(x2.shape, x2.dtype),
            jax.ShapeDtypeStruct(y2.shape, y2.dtype),
            jax.ShapeDtypeStruct(z2.shape, z2.dtype),
        ),
        in_specs=[vmem, vmem, vmem],
        out_specs=(vmem, vmem, vmem),
        input_output_aliases={1: 1},  # out1 reuses y's buffer (out1 == y)
    )(x2, y2, z2)

    out0 = _from_lane_dense_2d(out0_2, x.shape, x.size)
    out1 = _from_lane_dense_2d(out1_2, y.shape, y.size)
    out2 = _from_lane_dense_2d(out2_2, z.shape, z.size)
    return out0, out1, out2


if __name__ == "__main__":
    key = jax.random.PRNGKey(0)
    kx, ky, kz = jax.random.split(key, 3)

    # Small shapes consistent with the elementwise forward pass.
    x = jax.random.uniform(kx, (2, 4, 16, 16), dtype=jnp.float32)
    y = jax.random.uniform(ky, (2, 4, 16, 16), dtype=jnp.float32)
    z = jax.random.uniform(kz, (2, 3, 16), dtype=jnp.float32) * 2.0  # some values > 1.1

    out0, out1, out2 = jax.jit(model_forward)(x, y, z)
    jax.block_until_ready((out0, out1, out2))

    # Reference check against plain JAX semantics (same as torch.minimum).
    ref0 = jnp.minimum(x, y)
    ref1 = jnp.minimum(y, y)
    ref2 = jnp.minimum(z, jnp.ones_like(z) + 0.1)

    assert out0.shape == x.shape and out0.dtype == x.dtype
    assert out1.shape == y.shape and out1.dtype == y.dtype
    assert out2.shape == z.shape and out2.dtype == z.dtype
    assert jnp.allclose(out0, ref0)
    assert jnp.allclose(out1, ref1)
    assert jnp.allclose(out2, ref2)

    print("KERNEL_OK")
</pallas_src>

<mosaic_0001>
module attributes {stable_mosaic.version = 11 : i64} {
  func.func @_fused_minimum_kernel(%arg0: memref<16x128xf32, #tpu.memory_space<vmem>>, %arg1: memref<16x128xf32, #tpu.memory_space<vmem>>, %arg2: memref<1x128xf32, #tpu.memory_space<vmem>>, %arg3: memref<16x128xf32, #tpu.memory_space<vmem>>, %arg4: memref<16x128xf32, #tpu.memory_space<vmem>>, %arg5: memref<1x128xf32, #tpu.memory_space<vmem>>) attributes {dimension_semantics = [], scalar_prefetch = 0 : i64, scratch_operands = 0 : i64, tpu.core_type = #tpu.core_type<tc>} {
    %c0 = arith.constant 0 : index
    %c0_0 = arith.constant 0 : index
    %0 = vector.load %arg1[%c0, %c0_0] : memref<16x128xf32, #tpu.memory_space<vmem>>, vector<16x128xf32>
    %c0_1 = arith.constant 0 : index
    %c0_2 = arith.constant 0 : index
    %1 = vector.load %arg0[%c0_1, %c0_2] : memref<16x128xf32, #tpu.memory_space<vmem>>, vector<16x128xf32>
    %2 = arith.minimumf %1, %0 : vector<16x128xf32>
    %c0_3 = arith.constant 0 : index
    %c0_4 = arith.constant 0 : index
    %3 = vector.load %arg3[%c0_3, %c0_4] : memref<16x128xf32, #tpu.memory_space<vmem>>, vector<16x128xf32>
    tpu.vector_store %arg3[%c0_3, %c0_4], %2 {strides = array<i32>} : memref<16x128xf32, #tpu.memory_space<vmem>>, vector<16x128xf32>,
    %c0_5 = arith.constant 0 : index
    %c0_6 = arith.constant 0 : index
    %4 = vector.load %arg4[%c0_5, %c0_6] : memref<16x128xf32, #tpu.memory_space<vmem>>, vector<16x128xf32>
    tpu.vector_store %arg4[%c0_5, %c0_6], %0 {strides = array<i32>} : memref<16x128xf32, #tpu.memory_space<vmem>>, vector<16x128xf32>,
    %c0_7 = arith.constant 0 : index
    %c0_8 = arith.constant 0 : index
    %5 = vector.load %arg2[%c0_7, %c0_8] : memref<1x128xf32, #tpu.memory_space<vmem>>, vector<1x128xf32>
    %cst = arith.constant 1.000000e+00 : f32
    %cst_9 = arith.constant 1.000000e-01 : f32
    %6 = arith.addf %cst, %cst_9 : f32
    %7 = vector.broadcast %6 : f32 to vector<1x128xf32>
    %8 = arith.minimumf %5, %7 : vector<1x128xf32>
    %c0_10 = arith.constant 0 : index
    %c0_11 = arith.constant 0 : index
    %9 = vector.load %arg5[%c0_10, %c0_11] : memref<1x128xf32, #tpu.memory_space<vmem>>, vector<1x128xf32>
    tpu.vector_store %arg5[%c0_10, %c0_11], %8 {strides = array<i32>} : memref<1x128xf32, #tpu.memory_space<vmem>>, vector<1x128xf32>,
    return
  }
}

</mosaic_0001>

<bundles_post_ra>
// kernel: model_forward.1
= control target key start
LH: loop header
LB: loop body
LE: loop exit
PB: predicated region body
PF: predicated region fallthrough
CT: control target
= control target key end

     0   :  { %s102_s0 = inlined_call_operand.vmem [shape: f32[16,128], index: 0, kind: input, shape index: {}]   ;;  %s103_s1 = inlined_call_operand.vmem [shape: f32[16,128], index: 1, kind: input, shape index: {}, may-alias: {1,4}]   ;;  %s104_s4 = inlined_call_operand.vmem [shape: f32[16,128], index: 4, kind: output, shape index: {1}, may-alias: {1,4}]   ;;  %s105_s2 = inlined_call_operand.vmem [shape: f32[1,128], index: 2, kind: input, shape index: {}]   ;;  %s106_s3 = inlined_call_operand.vmem [shape: f32[16,128], index: 3, kind: output, shape index: {0}]   ;;  %s107_s5 = inlined_call_operand.vmem [shape: f32[1,128], index: 5, kind: output, shape index: {2}]  }
   0x1   :  { %v17_v0 = vld [vmem:[%s103_s1] sm:$0xff]  ;;  %v18_v2 = vld [vmem:[%s103_s1 + $0x8] sm:$0xff] }
   0x2   :  { %v19_v1 = vld [vmem:[%s102_s0] sm:$0xff]  ;;  %v20_v4 = vld [vmem:[%s102_s0 + $0x8] sm:$0xff]  ;;  %25 = vst [vmem:[%s104_s4] sm:$0xff] %v17_v0 }
   0x3   :  { %v21_v3 = vmin.f32 %v19_v1, %v17_v0  ;;  %v27_v5 = vld [vmem:[%s105_s2] sm:$0x1]  ;;  %v22_v6 = vmin.f32 %v20_v4, %v18_v2  ;;  %26 = vst [vmem:[%s104_s4 + $0x8] sm:$0xff] %v18_v2 }
   0x4   :  { %v28_v7 = vmin.f32 %v27_v5, 1.1 }
   0x5   :  { %23 = vst [vmem:[%s106_s3] sm:$0xff] %v21_v3 }
   0x6   :  { %24 = vst [vmem:[%s106_s3 + $0x8] sm:$0xff] %v22_v6 }
   0x7   :  { %29 = vst [vmem:[%s107_s5] sm:$0x1] %v28_v7 }

</bundles_post_ra>
